<compile_context>
chip_gen: v5e
topology: v5e:2x2
jax: 0.10.0
libtpu: 0.0.40
codegen_flags: <defaults>
</compile_context>

<pallas_src>
import functools
import math

import jax
import jax.numpy as jnp
from jax.experimental import pallas as pl
from jax.experimental.pallas import tpu as pltpu


def _encoder_block_kernel(num_heads, batch, seq,
                          x_ref, wa_ref, w1_ref, w2_ref, bias_ref,
                          out_ref, ctx_scratch):
    """Whole-problem kernel. Token rows are b-major: n = b*S + s.

    x_ref:       (N, E)   activations
    wa_ref:      (E, 4E)  [Wq^T * 1/sqrt(Dh) | Wk^T | Wv^T | Wo^T]  (lane-dense)
    w1_ref:      (E, 4E)  MLP weight 1, pre-transposed
    w2_ref:      (4E, E)  MLP weight 2, pre-transposed
    bias_ref:    (8, LW)  packed bias slab (one vector per sublane row)
    ctx_scratch: (N, E)   f32 VMEM scratch for the head-merge relayout
    """
    H, B, S = num_heads, batch, seq
    x = x_ref[...]                                   # (N, E) f32
    N, E = x.shape
    Dh = E // H
    E3 = 3 * E
    E4 = 4 * E

    gamma = bias_ref[0:1, :E]                        # (1, E)
    beta = bias_ref[1:2, :E]
    bqkv = bias_ref[2:3, :E3]                        # q-part pre-scaled by 1/sqrt(Dh)
    bo = bias_ref[3:4, :E]
    b1 = bias_ref[4:5, :E4]
    b2 = bias_ref[5:6, :E]

    eps = 1e-5

    def layernorm(v):                                # shared gamma/beta (same module twice)
        mu = jnp.mean(v, axis=-1, keepdims=True)
        c = v - mu
        var = jnp.mean(c * c, axis=-1, keepdims=True)
        return c * jax.lax.rsqrt(var + eps) * gamma + beta

    # ---------------- attention branch ----------------
    ln1 = layernorm(x)                               # (N, E)

    # Fused QKV projection: ONE MXU push with a 3E-wide output.
    qkv = jnp.dot(ln1, wa_ref[:, :E3],
                  preferred_element_type=jnp.float32) + bqkv        # (N, 3E)

    # Head split: static lane slices -> (B, S, Dh) leading reshape -> concat on
    # the leading axis, giving (H*B, S, Dh) with g = h*B + b.  No (N,N) mask is
    # needed because each (S,S) score block is a single batch.
    def split_heads(col0):
        parts = [qkv[:, col0 + h * Dh: col0 + (h + 1) * Dh].reshape(B, S, Dh)
                 for h in range(H)]
        return jnp.concatenate(parts, axis=0)        # (H*B, S, Dh)

    q = split_heads(0)
    k = split_heads(E)
    v = split_heads(2 * E)

    s_att = jnp.einsum('gqd,gkd->gqk', q, k,
                       preferred_element_type=jnp.float32)          # (H*B, S, S)
    s_att = s_att - jnp.max(s_att, axis=-1, keepdims=True)
    p = jnp.exp(s_att)
    # Exact divide (tiny denominator count) to keep parity with the reference.
    p = p / jnp.sum(p, axis=-1, keepdims=True)
    ctx = jnp.einsum('gqk,gkd->gqd', p, v,
                     preferred_element_type=jnp.float32)            # (H*B, S, Dh)

    # Head merge: relayout per-head context into its lane slice of a VMEM
    # scratch (pure data movement), then ONE (N,E)@(E,E) out-projection matmul.
    for h in range(H):
        blk = ctx[h * B:(h + 1) * B].reshape(N, Dh)  # (N, Dh), n = b*S + s
        ctx_scratch[:, h * Dh:(h + 1) * Dh] = blk
    attn = jnp.dot(ctx_scratch[...], wa_ref[:, E3:],
                   preferred_element_type=jnp.float32) + bo         # (N, E)

    r1 = attn + x                                    # first residual

    # ---------------- MLP branch ----------------
    ln2 = layernorm(r1)                              # same gamma/beta as first norm
    h1 = jnp.dot(ln2, w1_ref[...], preferred_element_type=jnp.float32) + b1   # (N, 4E)
    # Exact-erf GELU to match nn.GELU default numerics.
    h1 = 0.5 * h1 * (1.0 + jax.lax.erf(h1 * (1.0 / math.sqrt(2.0))))
    mlp = jnp.dot(h1, w2_ref[...], preferred_element_type=jnp.float32) + b2   # (N, E)

    out_ref[...] = mlp + r1


def encoder_block(emb_patches, params, *, num_heads):
    """emb_patches: (S, B, E) float32, seq-first like PyTorch nn.MultiheadAttention."""
    S, B, E = emb_patches.shape
    H = num_heads
    assert E % H == 0, "latent_size must be divisible by num_heads"
    Dh = E // H
    N = S * B
    E3, E4 = 3 * E, 4 * E
    scale = 1.0 / math.sqrt(Dh)

    # Parameters in PyTorch layout; defensive reshapes so (E,) / (1,E) both work.
    gamma = jnp.asarray(params["gamma"]).reshape(E)
    beta = jnp.asarray(params["beta"]).reshape(E)
    wqkv = jnp.asarray(params["in_proj_w"]).reshape(E3, E)
    bqkv = jnp.asarray(params["in_proj_b"]).reshape(E3)
    wo = jnp.asarray(params["out_proj_w"]).reshape(E, E)
    bo = jnp.asarray(params["out_proj_b"]).reshape(E)
    w1 = jnp.asarray(params["mlp_w1"]).reshape(E4, E)
    b1 = jnp.asarray(params["mlp_b1"]).reshape(E4)
    w2 = jnp.asarray(params["mlp_w2"]).reshape(E, E4)
    b2 = jnp.asarray(params["mlp_b2"]).reshape(E)

    # --- one-time host-side layout plumbing (outside the kernel) ---
    # Pre-transpose every weight (no in-kernel .T), fold the 1/sqrt(Dh) softmax
    # scale into Wq / bq, and pack the attention weights into one lane-dense
    # (E, 4E) slab: [Wq^T*s | Wk^T | Wv^T | Wo^T].
    wqkv_t = wqkv.T                                                  # (E, 3E)
    wqkv_t = jnp.concatenate([wqkv_t[:, :E] * scale, wqkv_t[:, E:]], axis=1)
    wa = jnp.concatenate([wqkv_t, wo.T], axis=1)                     # (E, 4E)
    w1_t = w1.T                                                      # (E, 4E)
    w2_t = w2.T                                                      # (4E, E)
    bqkv_s = jnp.concatenate([bqkv[:E] * scale, bqkv[E:]])

    # Pack all small bias/affine vectors into a single (8, LW) slab -> one DMA
    # instead of six tiny ones.
    LW = max(E4, 128)
    bias_slab = jnp.zeros((8, LW), jnp.float32)
    bias_slab = bias_slab.at[0, :E].set(gamma)
    bias_slab = bias_slab.at[1, :E].set(beta)
    bias_slab = bias_slab.at[2, :E3].set(bqkv_s)
    bias_slab = bias_slab.at[3, :E].set(bo)
    bias_slab = bias_slab.at[4, :E4].set(b1)
    bias_slab = bias_slab.at[5, :E].set(b2)

    # b-major token layout (n = b*S + s): removes the in-kernel cross-batch
    # mask; attention becomes H*B independent (S, S) blocks.
    x2d = jnp.transpose(emb_patches, (1, 0, 2)).reshape(N, E)

    inputs = (x2d, wa, w1_t, w2_t, bias_slab)

    def full_spec(a):
        return pl.BlockSpec(a.shape, lambda i: (0, 0))               # all inputs are 2D

    out2d = pl.pallas_call(
        functools.partial(_encoder_block_kernel, H, B, S),
        out_shape=jax.ShapeDtypeStruct((N, E), jnp.float32),
        grid_spec=pltpu.PrefetchScalarGridSpec(
            num_scalar_prefetch=0,
            # Single grid step: whole problem stays resident in VMEM; no
            # per-step pipeline overhead at this toy size.
            grid=(1,),
            in_specs=[full_spec(a) for a in inputs],
            out_specs=pl.BlockSpec((N, E), lambda i: (0, 0)),
            scratch_shapes=[pltpu.VMEM((N, E), jnp.float32)],
        ),
        compiler_params=pltpu.CompilerParams(
            dimension_semantics=("arbitrary",)),
    )(*inputs)

    # Back to (S, B, E) seq-first layout.
    return out2d.reshape(B, S, E).transpose(1, 0, 2)


def init_params(key, latent_size):
    E = latent_size
    ks = jax.random.split(key, 6)
    s = 0.02
    return {
        "gamma":      jnp.ones((1, E), jnp.float32),
        "beta":       jnp.zeros((1, E), jnp.float32),
        "in_proj_w":  s * jax.random.normal(ks[0], (3 * E, E), jnp.float32),
        "in_proj_b":  jnp.zeros((1, 3 * E), jnp.float32),
        "out_proj_w": s * jax.random.normal(ks[1], (E, E), jnp.float32),
        "out_proj_b": jnp.zeros((1, E), jnp.float32),
        "mlp_w1":     s * jax.random.normal(ks[2], (4 * E, E), jnp.float32),
        "mlp_b1":     s * jax.random.normal(ks[3], (1, 4 * E), jnp.float32),
        "mlp_w2":     s * jax.random.normal(ks[4], (E, 4 * E), jnp.float32),
        "mlp_b2":     s * jax.random.normal(ks[5], (1, E), jnp.float32),
    }


if __name__ == "__main__":
    # args.latent_size=32, args.num_heads=4, args.dropout=0.1 (identity at inference)
    SEQ, BATCH, LATENT, HEADS = 8, 2, 32, 4

    key = jax.random.PRNGKey(0)
    k_x, k_p = jax.random.split(key)
    emb_patches = jax.random.normal(k_x, (SEQ, BATCH, LATENT), jnp.float32)
    params = init_params(k_p, LATENT)

    out = encoder_block(emb_patches, params, num_heads=HEADS)
    jax.block_until_ready(out)
    assert out.shape == (SEQ, BATCH, LATENT)
    print("KERNEL_OK")
</pallas_src>

<mosaic_0001>
module attributes {stable_mosaic.version = 11 : i64} {
  func.func @_encoder_block_kernel(%arg0: i32, %arg1: memref<16x32xf32, #tpu.memory_space<vmem>>, %arg2: memref<32x128xf32, #tpu.memory_space<vmem>>, %arg3: memref<32x128xf32, #tpu.memory_space<vmem>>, %arg4: memref<128x32xf32, #tpu.memory_space<vmem>>, %arg5: memref<8x128xf32, #tpu.memory_space<vmem>>, %arg6: memref<16x32xf32, #tpu.memory_space<vmem>>, %arg7: memref<16x32xf32, #tpu.memory_space<vmem>>) attributes {dimension_semantics = [#tpu.dimension_semantics<arbitrary>], iteration_bounds = array<i64: 1>, scalar_prefetch = 0 : i64, scratch_operands = 1 : i64, tpu.core_type = #tpu.core_type<tc>, window_params = [{pipeline_mode = #tpu.pipeline_mode<synchronous>, transform_indices = @transform_0, window_bounds = array<i64: 16, 32>}, {pipeline_mode = #tpu.pipeline_mode<synchronous>, transform_indices = @transform_1, window_bounds = array<i64: 32, 128>}, {pipeline_mode = #tpu.pipeline_mode<synchronous>, transform_indices = @transform_2, window_bounds = array<i64: 32, 128>}, {pipeline_mode = #tpu.pipeline_mode<synchronous>, transform_indices = @transform_3, window_bounds = array<i64: 128, 32>}, {pipeline_mode = #tpu.pipeline_mode<synchronous>, transform_indices = @transform_4, window_bounds = array<i64: 8, 128>}, {pipeline_mode = #tpu.pipeline_mode<synchronous>, transform_indices = @transform_5, window_bounds = array<i64: 16, 32>}]} {
    %c0 = arith.constant 0 : index
    %c0_0 = arith.constant 0 : index
    %0 = vector.load %arg1[%c0, %c0_0] : memref<16x32xf32, #tpu.memory_space<vmem>>, vector<16x32xf32>
    %c0_1 = arith.constant 0 : index
    %c0_2 = arith.constant 0 : index
    %1 = vector.load %arg5[%c0_1, %c0_2] : memref<8x128xf32, #tpu.memory_space<vmem>>, vector<1x32xf32>
    %c1 = arith.constant 1 : index
    %c0_3 = arith.constant 0 : index
    %2 = vector.load %arg5[%c1, %c0_3] : memref<8x128xf32, #tpu.memory_space<vmem>>, vector<1x32xf32>
    %c2 = arith.constant 2 : index
    %c0_4 = arith.constant 0 : index
    %3 = vector.load %arg5[%c2, %c0_4] : memref<8x128xf32, #tpu.memory_space<vmem>>, vector<1x96xf32>
    %c3 = arith.constant 3 : index
    %c0_5 = arith.constant 0 : index
    %4 = vector.load %arg5[%c3, %c0_5] : memref<8x128xf32, #tpu.memory_space<vmem>>, vector<1x32xf32>
    %c4 = arith.constant 4 : index
    %c0_6 = arith.constant 0 : index
    %5 = vector.load %arg5[%c4, %c0_6] : memref<8x128xf32, #tpu.memory_space<vmem>>, vector<1x128xf32>
    %c5 = arith.constant 5 : index
    %c0_7 = arith.constant 0 : index
    %6 = vector.load %arg5[%c5, %c0_7] : memref<8x128xf32, #tpu.memory_space<vmem>>, vector<1x32xf32>
    %cst = arith.constant dense<0.000000e+00> : vector<16xf32>
    %7 = vector.multi_reduction <add>, %0, %cst [1] : vector<16x32xf32> to vector<16xf32>
    %8 = vector.shape_cast %7 : vector<16xf32> to vector<16x1xf32>
    %cst_8 = arith.constant 3.200000e+01 : f32
    %9 = vector.broadcast %cst_8 : f32 to vector<16x1xf32>
    %10 = arith.divf %8, %9 : vector<16x1xf32>
    %11 = vector.broadcast %10 : vector<16x1xf32> to vector<16x32xf32>
    %12 = arith.subf %0, %11 : vector<16x32xf32>
    %13 = arith.mulf %12, %12 : vector<16x32xf32>
    %cst_9 = arith.constant dense<0.000000e+00> : vector<16xf32>
    %14 = vector.multi_reduction <add>, %13, %cst_9 [1] : vector<16x32xf32> to vector<16xf32>
    %15 = vector.shape_cast %14 : vector<16xf32> to vector<16x1xf32>
    %cst_10 = arith.constant 3.200000e+01 : f32
    %16 = vector.broadcast %cst_10 : f32 to vector<16x1xf32>
    %17 = arith.divf %15, %16 : vector<16x1xf32>
    %cst_11 = arith.constant 9.99999974E-6 : f32
    %18 = vector.broadcast %cst_11 : f32 to vector<16x1xf32>
    %19 = arith.addf %17, %18 : vector<16x1xf32>
    %20 = math.rsqrt %19 : vector<16x1xf32>
    %21 = vector.broadcast %20 : vector<16x1xf32> to vector<16x32xf32>
    %22 = arith.mulf %12, %21 : vector<16x32xf32>
    %23 = vector.broadcast %1 : vector<1x32xf32> to vector<16x32xf32>
    %24 = arith.mulf %22, %23 : vector<16x32xf32>
    %25 = vector.broadcast %2 : vector<1x32xf32> to vector<16x32xf32>
    %26 = arith.addf %24, %25 : vector<16x32xf32>
    %c0_12 = arith.constant 0 : index
    %c0_13 = arith.constant 0 : index
    %27 = vector.load %arg2[%c0_12, %c0_13] : memref<32x128xf32, #tpu.memory_space<vmem>>, vector<32x96xf32>
    %cst_14 = arith.constant dense<0.000000e+00> : vector<16x96xf32>
    %28 = tpu.matmul %26, %27, %cst_14 {dimension_numbers = #tpu.dot_dimension_numbers<[1], [0], [0], [1], [0, 0, 1, 1], [], []>} : vector<16x32xf32>, vector<32x96xf32>, vector<16x96xf32> -> vector<16x96xf32>
    %29 = vector.broadcast %3 : vector<1x96xf32> to vector<16x96xf32>
    %30 = arith.addf %28, %29 : vector<16x96xf32>
    %31 = vector.extract_strided_slice %30 {offsets = [0, 0], sizes = [16, 8], strides = [1, 1]} : vector<16x96xf32> to vector<16x8xf32>
    %32 = vector.shape_cast %31 : vector<16x8xf32> to vector<2x8x8xf32>
    %33 = vector.extract_strided_slice %30 {offsets = [0, 8], sizes = [16, 8], strides = [1, 1]} : vector<16x96xf32> to vector<16x8xf32>
    %34 = vector.shape_cast %33 : vector<16x8xf32> to vector<2x8x8xf32>
    %35 = vector.extract_strided_slice %30 {offsets = [0, 16], sizes = [16, 8], strides = [1, 1]} : vector<16x96xf32> to vector<16x8xf32>
    %36 = vector.shape_cast %35 : vector<16x8xf32> to vector<2x8x8xf32>
    %37 = vector.extract_strided_slice %30 {offsets = [0, 24], sizes = [16, 8], strides = [1, 1]} : vector<16x96xf32> to vector<16x8xf32>
    %38 = vector.shape_cast %37 : vector<16x8xf32> to vector<2x8x8xf32>
    %39 = tpu.concatenate %32, %34, %36, %38 in 0 : vector<2x8x8xf32>, vector<2x8x8xf32>, vector<2x8x8xf32>, vector<2x8x8xf32> -> vector<8x8x8xf32>
    %40 = vector.extract_strided_slice %30 {offsets = [0, 32], sizes = [16, 8], strides = [1, 1]} : vector<16x96xf32> to vector<16x8xf32>
    %41 = vector.shape_cast %40 : vector<16x8xf32> to vector<2x8x8xf32>
    %42 = vector.extract_strided_slice %30 {offsets = [0, 40], sizes = [16, 8], strides = [1, 1]} : vector<16x96xf32> to vector<16x8xf32>
    %43 = vector.shape_cast %42 : vector<16x8xf32> to vector<2x8x8xf32>
    %44 = vector.extract_strided_slice %30 {offsets = [0, 48], sizes = [16, 8], strides = [1, 1]} : vector<16x96xf32> to vector<16x8xf32>
    %45 = vector.shape_cast %44 : vector<16x8xf32> to vector<2x8x8xf32>
    %46 = vector.extract_strided_slice %30 {offsets = [0, 56], sizes = [16, 8], strides = [1, 1]} : vector<16x96xf32> to vector<16x8xf32>
    %47 = vector.shape_cast %46 : vector<16x8xf32> to vector<2x8x8xf32>
    %48 = tpu.concatenate %41, %43, %45, %47 in 0 : vector<2x8x8xf32>, vector<2x8x8xf32>, vector<2x8x8xf32>, vector<2x8x8xf32> -> vector<8x8x8xf32>
    %49 = vector.extract_strided_slice %30 {offsets = [0, 64], sizes = [16, 8], strides = [1, 1]} : vector<16x96xf32> to vector<16x8xf32>
    %50 = vector.shape_cast %49 : vector<16x8xf32> to vector<2x8x8xf32>
    %51 = vector.extract_strided_slice %30 {offsets = [0, 72], sizes = [16, 8], strides = [1, 1]} : vector<16x96xf32> to vector<16x8xf32>
    %52 = vector.shape_cast %51 : vector<16x8xf32> to vector<2x8x8xf32>
    %53 = vector.extract_strided_slice %30 {offsets = [0, 80], sizes = [16, 8], strides = [1, 1]} : vector<16x96xf32> to vector<16x8xf32>
    %54 = vector.shape_cast %53 : vector<16x8xf32> to vector<2x8x8xf32>
    %55 = vector.extract_strided_slice %30 {offsets = [0, 88], sizes = [16, 8], strides = [1, 1]} : vector<16x96xf32> to vector<16x8xf32>
    %56 = vector.shape_cast %55 : vector<16x8xf32> to vector<2x8x8xf32>
    %57 = tpu.concatenate %50, %52, %54, %56 in 0 : vector<2x8x8xf32>, vector<2x8x8xf32>, vector<2x8x8xf32>, vector<2x8x8xf32> -> vector<8x8x8xf32>
    "tpu.trace_start"() <{level = 10 : i32, message = "gqd,gkd->gqk"}> : () -> ()
    %cst_15 = arith.constant dense<0.000000e+00> : vector<8x8x8xf32>
    %58 = tpu.matmul %39, %48, %cst_15 {dimension_numbers = #tpu.dot_dimension_numbers<[2], [2], [1], [1], [0, 0, 0, 1, 1, 1], [0], [0]>} : vector<8x8x8xf32>, vector<8x8x8xf32>, vector<8x8x8xf32> -> vector<8x8x8xf32>
    "tpu.trace_stop"() : () -> ()
    %cst_16 = arith.constant dense<0xFF800000> : vector<8x8xf32>
    %59 = vector.multi_reduction <maximumf>, %58, %cst_16 [2] : vector<8x8x8xf32> to vector<8x8xf32>
    %60 = vector.shape_cast %59 : vector<8x8xf32> to vector<8x8x1xf32>
    %61 = vector.broadcast %60 : vector<8x8x1xf32> to vector<8x8x8xf32>
    %62 = arith.subf %58, %61 : vector<8x8x8xf32>
    %63 = math.exp %62 : vector<8x8x8xf32>
    %cst_17 = arith.constant dense<0.000000e+00> : vector<8x8xf32>
    %64 = vector.multi_reduction <add>, %63, %cst_17 [2] : vector<8x8x8xf32> to vector<8x8xf32>
    %65 = vector.shape_cast %64 : vector<8x8xf32> to vector<8x8x1xf32>
    %66 = vector.broadcast %65 : vector<8x8x1xf32> to vector<8x8x8xf32>
    %67 = arith.divf %63, %66 : vector<8x8x8xf32>
    "tpu.trace_start"() <{level = 10 : i32, message = "gqk,gkd->gqd"}> : () -> ()
    %cst_18 = arith.constant dense<0.000000e+00> : vector<8x8x8xf32>
    %68 = tpu.matmul %67, %57, %cst_18 {dimension_numbers = #tpu.dot_dimension_numbers<[2], [1], [1], [2], [0, 0, 0, 1, 1, 2], [0], [0]>} : vector<8x8x8xf32>, vector<8x8x8xf32>, vector<8x8x8xf32> -> vector<8x8x8xf32>
    "tpu.trace_stop"() : () -> ()
    %69 = vector.extract_strided_slice %68 {offsets = [0, 0, 0], sizes = [2, 8, 8], strides = [1, 1, 1]} : vector<8x8x8xf32> to vector<2x8x8xf32>
    %70 = vector.shape_cast %69 : vector<2x8x8xf32> to vector<16x8xf32>
    %c0_19 = arith.constant 0 : index
    %c0_20 = arith.constant 0 : index
    %71 = vector.load %arg7[%c0_19, %c0_20] : memref<16x32xf32, #tpu.memory_space<vmem>>, vector<16x8xf32>
    tpu.vector_store %arg7[%c0_19, %c0_20], %70 {strides = array<i32>} : memref<16x32xf32, #tpu.memory_space<vmem>>, vector<16x8xf32>,
    %72 = vector.extract_strided_slice %68 {offsets = [2, 0, 0], sizes = [2, 8, 8], strides = [1, 1, 1]} : vector<8x8x8xf32> to vector<2x8x8xf32>
    %73 = vector.shape_cast %72 : vector<2x8x8xf32> to vector<16x8xf32>
    %c0_21 = arith.constant 0 : index
    %c8 = arith.constant 8 : index
    %74 = vector.load %arg7[%c0_21, %c8] : memref<16x32xf32, #tpu.memory_space<vmem>>, vector<16x8xf32>
    tpu.vector_store %arg7[%c0_21, %c8], %73 {strides = array<i32>} : memref<16x32xf32, #tpu.memory_space<vmem>>, vector<16x8xf32>,
    %75 = vector.extract_strided_slice %68 {offsets = [4, 0, 0], sizes = [2, 8, 8], strides = [1, 1, 1]} : vector<8x8x8xf32> to vector<2x8x8xf32>
    %76 = vector.shape_cast %75 : vector<2x8x8xf32> to vector<16x8xf32>
    %c0_22 = arith.constant 0 : index
    %c16 = arith.constant 16 : index
    %77 = vector.load %arg7[%c0_22, %c16] : memref<16x32xf32, #tpu.memory_space<vmem>>, vector<16x8xf32>
    tpu.vector_store %arg7[%c0_22, %c16], %76 {strides = array<i32>} : memref<16x32xf32, #tpu.memory_space<vmem>>, vector<16x8xf32>,
    %78 = vector.extract_strided_slice %68 {offsets = [6, 0, 0], sizes = [2, 8, 8], strides = [1, 1, 1]} : vector<8x8x8xf32> to vector<2x8x8xf32>
    %79 = vector.shape_cast %78 : vector<2x8x8xf32> to vector<16x8xf32>
    %c0_23 = arith.constant 0 : index
    %c24 = arith.constant 24 : index
    %80 = vector.load %arg7[%c0_23, %c24] : memref<16x32xf32, #tpu.memory_space<vmem>>, vector<16x8xf32>
    tpu.vector_store %arg7[%c0_23, %c24], %79 {strides = array<i32>} : memref<16x32xf32, #tpu.memory_space<vmem>>, vector<16x8xf32>,
    %c0_24 = arith.constant 0 : index
    %c0_25 = arith.constant 0 : index
    %81 = vector.load %arg7[%c0_24, %c0_25] : memref<16x32xf32, #tpu.memory_space<vmem>>, vector<16x32xf32>
    %c0_26 = arith.constant 0 : index
    %c96 = arith.constant 96 : index
    %82 = vector.load %arg2[%c0_26, %c96] : memref<32x128xf32, #tpu.memory_space<vmem>>, vector<32x32xf32>
    %cst_27 = arith.constant dense<0.000000e+00> : vector<16x32xf32>
    %83 = tpu.matmul %81, %82, %cst_27 {dimension_numbers = #tpu.dot_dimension_numbers<[1], [0], [0], [1], [0, 0, 1, 1], [], []>} : vector<16x32xf32>, vector<32x32xf32>, vector<16x32xf32> -> vector<16x32xf32>
    %84 = vector.broadcast %4 : vector<1x32xf32> to vector<16x32xf32>
    %85 = arith.addf %83, %84 : vector<16x32xf32>
    %86 = arith.addf %85, %0 : vector<16x32xf32>
    %cst_28 = arith.constant dense<0.000000e+00> : vector<16xf32>
    %87 = vector.multi_reduction <add>, %86, %cst_28 [1] : vector<16x32xf32> to vector<16xf32>
    %88 = vector.shape_cast %87 : vector<16xf32> to vector<16x1xf32>
    %cst_29 = arith.constant 3.200000e+01 : f32
    %89 = vector.broadcast %cst_29 : f32 to vector<16x1xf32>
    %90 = arith.divf %88, %89 : vector<16x1xf32>
    %91 = vector.broadcast %90 : vector<16x1xf32> to vector<16x32xf32>
    %92 = arith.subf %86, %91 : vector<16x32xf32>
    %93 = arith.mulf %92, %92 : vector<16x32xf32>
    %cst_30 = arith.constant dense<0.000000e+00> : vector<16xf32>
    %94 = vector.multi_reduction <add>, %93, %cst_30 [1] : vector<16x32xf32> to vector<16xf32>
    %95 = vector.shape_cast %94 : vector<16xf32> to vector<16x1xf32>
    %cst_31 = arith.constant 3.200000e+01 : f32
    %96 = vector.broadcast %cst_31 : f32 to vector<16x1xf32>
    %97 = arith.divf %95, %96 : vector<16x1xf32>
    %cst_32 = arith.constant 9.99999974E-6 : f32
    %98 = vector.broadcast %cst_32 : f32 to vector<16x1xf32>
    %99 = arith.addf %97, %98 : vector<16x1xf32>
    %100 = math.rsqrt %99 : vector<16x1xf32>
    %101 = vector.broadcast %100 : vector<16x1xf32> to vector<16x32xf32>
    %102 = arith.mulf %92, %101 : vector<16x32xf32>
    %103 = vector.broadcast %1 : vector<1x32xf32> to vector<16x32xf32>
    %104 = arith.mulf %102, %103 : vector<16x32xf32>
    %105 = vector.broadcast %2 : vector<1x32xf32> to vector<16x32xf32>
    %106 = arith.addf %104, %105 : vector<16x32xf32>
    %c0_33 = arith.constant 0 : index
    %c0_34 = arith.constant 0 : index
    %107 = vector.load %arg3[%c0_33, %c0_34] : memref<32x128xf32, #tpu.memory_space<vmem>>, vector<32x128xf32>
    %cst_35 = arith.constant dense<0.000000e+00> : vector<16x128xf32>
    %108 = tpu.matmul %106, %107, %cst_35 {dimension_numbers = #tpu.dot_dimension_numbers<[1], [0], [0], [1], [0, 0, 1, 1], [], []>} : vector<16x32xf32>, vector<32x128xf32>, vector<16x128xf32> -> vector<16x128xf32>
    %109 = vector.broadcast %5 : vector<1x128xf32> to vector<16x128xf32>
    %110 = arith.addf %108, %109 : vector<16x128xf32>
    %cst_36 = arith.constant 5.000000e-01 : f32
    %111 = vector.broadcast %cst_36 : f32 to vector<16x128xf32>
    %112 = arith.mulf %111, %110 : vector<16x128xf32>
    %cst_37 = arith.constant 0.707106769 : f32
    %113 = vector.broadcast %cst_37 : f32 to vector<16x128xf32>
    %114 = arith.mulf %110, %113 : vector<16x128xf32>
    %115 = math.erf %114 : vector<16x128xf32>
    %cst_38 = arith.constant 1.000000e+00 : f32
    %116 = vector.broadcast %cst_38 : f32 to vector<16x128xf32>
    %117 = arith.addf %116, %115 : vector<16x128xf32>
    %118 = arith.mulf %112, %117 : vector<16x128xf32>
    %c0_39 = arith.constant 0 : index
    %c0_40 = arith.constant 0 : index
    %119 = vector.load %arg4[%c0_39, %c0_40] : memref<128x32xf32, #tpu.memory_space<vmem>>, vector<128x32xf32>
    %cst_41 = arith.constant dense<0.000000e+00> : vector<16x32xf32>
    %120 = tpu.matmul %118, %119, %cst_41 {dimension_numbers = #tpu.dot_dimension_numbers<[1], [0], [0], [1], [0, 0, 1, 1], [], []>} : vector<16x128xf32>, vector<128x32xf32>, vector<16x32xf32> -> vector<16x32xf32>
    %121 = vector.broadcast %6 : vector<1x32xf32> to vector<16x32xf32>
    %122 = arith.addf %120, %121 : vector<16x32xf32>
    %123 = arith.addf %122, %86 : vector<16x32xf32>
    %c0_42 = arith.constant 0 : index
    %c0_43 = arith.constant 0 : index
    %124 = vector.load %arg6[%c0_42, %c0_43] : memref<16x32xf32, #tpu.memory_space<vmem>>, vector<16x32xf32>
    tpu.vector_store %arg6[%c0_42, %c0_43], %123 {strides = array<i32>} : memref<16x32xf32, #tpu.memory_space<vmem>>, vector<16x32xf32>,
    return
  }
  func.func @transform_0(%arg0: i32) -> (i32, i32) {
    %c0_i32 = arith.constant 0 : i32
    %c0_i32_0 = arith.constant 0 : i32
    %c0_i32_1 = arith.constant 0 : i32
    return %c0_i32, %c0_i32_0 : i32, i32
  }
  func.func @transform_1(%arg0: i32) -> (i32, i32) {
    %c0_i32 = arith.constant 0 : i32
    %c0_i32_0 = arith.constant 0 : i32
    %c0_i32_1 = arith.constant 0 : i32
    return %c0_i32, %c0_i32_0 : i32, i32
  }
  func.func @transform_2(%arg0: i32) -> (i32, i32) {
    %c0_i32 = arith.constant 0 : i32
    %c0_i32_0 = arith.constant 0 : i32
    %c0_i32_1 = arith.constant 0 : i32
    return %c0_i32, %c0_i32_0 : i32, i32
  }
  func.func @transform_3(%arg0: i32) -> (i32, i32) {
    %c0_i32 = arith.constant 0 : i32
    %c0_i32_0 = arith.constant 0 : i32
    %c0_i32_1 = arith.constant 0 : i32
    return %c0_i32, %c0_i32_0 : i32, i32
  }
  func.func @transform_4(%arg0: i32) -> (i32, i32) {
    %c0_i32 = arith.constant 0 : i32
    %c0_i32_0 = arith.constant 0 : i32
    %c0_i32_1 = arith.constant 0 : i32
    return %c0_i32, %c0_i32_0 : i32, i32
  }
  func.func @transform_5(%arg0: i32) -> (i32, i32) {
    %c0_i32 = arith.constant 0 : i32
    %c0_i32_0 = arith.constant 0 : i32
    %c0_i32_1 = arith.constant 0 : i32
    return %c0_i32, %c0_i32_0 : i32, i32
  }
}

</mosaic_0001>

<bundles_post_ra>
// kernel: tpu_custom_call.1
= control target key start
LH: loop header
LB: loop body
LE: loop exit
PB: predicated region body
PF: predicated region fallthrough
CT: control target
= control target key end

     0   :  { %vm29_vm0 = vcmask 261120   ;;  %s1583_s0 = inlined_call_operand.vmem [shape: f32[16,32], index: 0, kind: input, shape index: {}]   ;;  %s1584_s1 = inlined_call_operand.vmem [shape: f32[32,128], index: 1, kind: input, shape index: {}]   ;;  %s1585_s2 = inlined_call_operand.vmem [shape: f32[32,128], index: 2, kind: input, shape index: {}]   ;;  %s1586_s3 = inlined_call_operand.vmem [shape: f32[128,32], index: 3, kind: input, shape index: {}]   ;;  %s1587_s4 = inlined_call_operand.vmem [shape: f32[8,128], index: 4, kind: input, shape index: {}]   ;;  %s1588_s5 = inlined_call_operand.hbm [shape: f32[16,32], index: 5, kind: output, shape index: {}]  }
   0x1   :  { %v1257_v0 = vld [vmem:[%s1583_s0] sm:$0xff] }
   0x2   :  { %v30_v1 = vsel %vm29_vm0, %v1257_v0, 0.0 }
   0x3   :  { %31 = vadd.xlane.f32.xlu0 %v30_v1 }
   0x4   :  { %10 = vsyncpa [#allocation4], 0  ;;  %v1264_v2 = vld [vmem:[%s1583_s0 + $0x8] sm:$0xff]  ;;  %v1212_v4 = vmov 32.0   ;;  %v1279_v21 = vld [vmem:[%s1584_s1 + $0x18] sm:$0xff]  ;;  %s1213_s9 = smov 120  }
   0x5   :  { %v33_v3 = vsel %vm29_vm0, %v1264_v2, 0.0  ;;  %1140 = vrcp.f32 %v1212_v4  ;;  %110 = vmatpush.msra.mxu0 %v1279_v21  ;;  %v1285_v22 = vld [vmem:[%s1584_s1 + $0x10] sm:$0xff]  ;;  %v1291_v23 = vld [vmem:[%s1584_s1 + $0x8] sm:$0xff]  ;;  %v1297_v24 = vld [vmem:[%s1584_s1] sm:$0xff]  ;;  %s1214_s10 = smov 112   ;;  %s1215_s11 = smov 96  }
   0x6   :  { %v1305_v39 = vld [vmem:[%s1587_s4] ss:$0 sm:$0xff]  ;;  %v1310_v43 = vld [vmem:[%s1587_s4 + $0x1] ss:$0 sm:$0xff]  ;;  %v1136_v53 = vld [vmem:[%s1587_s4 + $0x2] ss:$0 sm:$0xff] }
   0x7   :  { %111 = vmatpush.msra.mxu0 %v1285_v22  ;;  %s1216_s12 = smov 104   ;;  %vm137_vm8 = vcmask 64512   ;;  %s1217_s13 = smov 64  }
   0x8   :  { %s1218_s14 = smov 8   ;;  %s1219_s15 = smov 16  }
   0x9   :  { %112 = vmatpush.msra.mxu0 %v1291_v23  ;;  %s1220_s16 = smov 32   ;;  %s1221_s17 = smov 24  }
   0xa   :  { %s1222_s8 = smov [#allocation3]  }
   0xb   :  { %34 = vadd.xlane.f32.xlu0 %v33_v3  ;;  %v1141_v5 = vpop.eup %1140  ;;  %113 = vmatpush.msra.mxu0 %v1297_v24 }
   0xc   :  { %v37_v6 = vmul.f32 32.0, %v1141_v5  ;;  %vm41_vm1 = vweird.f32 %v1141_v5 }
   0xe   :  { %v38_v7 = vsub.f32 1.0, %v37_v6 }
  0x10   :  { %v39_v8 = vmul.f32 %v1141_v5, %v38_v7 }
  0x12   :  { %v40_v9 = vadd.f32 %v1141_v5, %v39_v8 }
  0x14   :  { %v1268_v10 = vsel %vm41_vm1, %v1141_v5, %v40_v9 }
  0x76   :  { %v32_v11 = vpop.xlane.xlu0 %31 }
  0x77   :  { %v43_v12 = vmul.f32 %v1268_v10, %v32_v11 }
  0x79   :  { %v45_v13 = vsub.f32 %v1257_v0, %v43_v12 }
  0x7b   :  { %v47_v14 = vmul.f32 %v45_v13, %v45_v13 }
  0x7d   :  { %v49_v15 = vsel %vm29_vm0, %v47_v14, 0.0 }
  0x7e   :  { %50 = vadd.xlane.f32.xlu1 %v49_v15  ;;  %v35_v16 = vpop.xlane.xlu0 %34 }
  0x7f   :  { %v44_v17 = vmul.f32 %v1268_v10, %v35_v16 }
  0x81   :  { %v46_v18 = vsub.f32 %v1264_v2, %v44_v17 }
  0x83   :  { %v48_v19 = vmul.f32 %v46_v18, %v46_v18 }
  0x85   :  { %v52_v20 = vsel %vm29_vm0, %v48_v19, 0.0 }
  0x86   :  { %53 = vadd.xlane.f32.xlu1 %v52_v20 }
  0xf1   :  { %v51_v25 = vpop.xlane.xlu1 %50 }
  0xf2   :  { %v55_v26 = vmul.f32 %v51_v25, %v1268_v10 }
  0xf4   :  { %v57_v27 = vadd.f32 1e-05, %v55_v26 }
  0xf6   :  { %1142 = vrsqrt.f32 %v57_v27  ;;  %vm65_vm3 = vweird.f32 %v57_v27 }
  0xf9   :  { %v54_v28 = vpop.xlane.xlu1 %53 }
  0xfa   :  { %v56_v29 = vmul.f32 %v54_v28, %v1268_v10 }
  0xfc   :  { %v1143_v30 = vpop.eup %1142  ;;  %v58_v31 = vadd.f32 1e-05, %v56_v29 }
  0xfd   :  { %v60_v32 = vmul.f32 %v1143_v30, %v57_v27  ;;  %vm66_vm2 = vweird.f32 %v1143_v30 }
  0xfe   :  { %1144 = vrsqrt.f32 %v58_v31  ;;  %vm67_vm4 = vmor %vm65_vm3, %vm66_vm2  ;;  %vm75_vm5 = vweird.f32 %v58_v31 }
  0xff   :  { %v61_v33 = vmul.f32 %v1143_v30, %v60_v32 }
 0x101   :  { %v62_v34 = vmul.f32 0.5, %v61_v33 }
 0x103   :  { %v63_v35 = vsub.f32 1.5, %v62_v34 }
 0x104   :  { %v1145_v36 = vpop.eup %1144 }
 0x105   :  { %v64_v37 = vmul.f32 %v1143_v30, %v63_v35  ;;  %v70_v38 = vmul.f32 %v1145_v36, %v58_v31  ;;  %vm76_vm6 = vweird.f32 %v1145_v36 }
 0x106   :  { %vm77_vm7 = vmor %vm75_vm5, %vm76_vm6 }
 0x107   :  { %v68_v40 = vsel %vm67_vm4, %v1143_v30, %v64_v37  ;;  %v71_v41 = vmul.f32 %v1145_v36, %v70_v38 }
 0x108   :  { %v79_v42 = vmul.f32 %v68_v40, %v45_v13 }
 0x109   :  { %v72_v44 = vmul.f32 0.5, %v71_v41 }
 0x10a   :  { %v82_v45 = vmul.f32 %v1305_v39, %v79_v42 }
 0x10b   :  { %v73_v46 = vsub.f32 1.5, %v72_v44 }
 0x10c   :  { %v85_v47 = vadd.f32 %v1310_v43, %v82_v45 }
 0x10d   :  { %v74_v48 = vmul.f32 %v1145_v36, %v73_v46 }
 0x10e   :  { %1065 = vmatmul.msk.f32.vlgmr.msra.gmra.mxu0 %vm29_vm0, %v85_v47 }
 0x10f   :  { %v78_v49 = vsel %vm77_vm7, %v1145_v36, %v74_v48 }
 0x110   :  { %v80_v50 = vmul.f32 %v78_v49, %v46_v18 }
 0x112   :  { %v83_v51 = vmul.f32 %v1305_v39, %v80_v50 }
 0x114   :  { %v86_v52 = vadd.f32 %v1310_v43, %v83_v51 }
 0x116   :  { %1066 = vmatmul.msk.f32.gmra.mxu0 %vm29_vm0, %v86_v52 }
 0x18b   :  { %v115_v54 = vpop.f32.mrf.mxu0 }
 0x18c   :  { %v1321_v55 = vadd.f32 %v1136_v53, %v115_v54 }
 0x18e   :  { %123 = vrot.lane.b32.xlu2 %v1321_v55, %s1213_s9  ;;  %127 = vrot.lane.b32.xlu1 %v1321_v55, %s1214_s10 }
 0x193   :  { %v118_v56 = vpop.f32.mrf.mxu0 }
 0x194   :  { %v1325_v57 = vadd.f32 %v1136_v53, %v118_v56 }
 0x196   :  { %129 = vrot.lane.b32.xlu0 %v1325_v57, %s1214_s10  ;;  %125 = vrot.lane.b32.xlu2 %v1325_v57, %s1213_s9  ;;  %s1051_s9 = sshll.u32 %s1222_s8, 4  ;;  %s1052_s9 = int_to_ptr.vmem [resolvable:$true] %s1051_s9 }
 0x19e   :  { %162 = vrot.lane.b32.xlu0 %v1325_v57, %s1215_s11  ;;  %131 = vrot.lane.b32.xlu2 %v1321_v55, %s1216_s12 }
 0x1a6   :  { %133 = vrot.lane.b32.xlu2 %v1325_v57, %s1216_s12  ;;  %s1053_s12 = sshll.u32 %s1588_s5, 4  ;;  %s1054_s12 = int_to_ptr.hbm [resolvable:$true] %s1053_s12 }
 0x1ae   :  { %135 = vrot.lane.b32.xlu2 %v1321_v55, %s1215_s11 }
 0x1e8   :  { %v1333_v58 = vpop.permute.xlu2 %123 }
 0x1e9   :  { %188 = vrot.lane.b32.xlu2 %v1333_v58, %s1215_s11  ;;  %v1109_v50 = vpack.i.bf16 %v1333_v58, %v1321_v55 }
 0x1f0   :  { %v1336_v59 = vpop.permute.xlu2 %125 }
 0x1f1   :  { %214 = vrot.lane.b32.xlu1 %v1336_v59, %s1215_s11 }
 0x1f8   :  { %v1339_v60 = vpop.permute.xlu2 %131 }
 0x1f9   :  { %292 = vrot.lane.b32.xlu1 %v1339_v60, %s1215_s11 }
 0x200   :  { %v1342_v61 = vpop.permute.xlu2 %133  ;;  %v128_v62 = vpop.permute.xlu1 %127 }
 0x201   :  { %240 = vrot.lane.b32.xlu2 %v128_v62, %s1215_s11  ;;  %v1114_v34 = vpack.i.bf16 %v1336_v59, %v128_v62 }
 0x208   :  { %v1344_v63 = vpop.permute.xlu0 %129  ;;  %v136_v1 = vpop.permute.xlu2 %135 }
 0x209   :  { %266 = vrot.lane.b32.xlu0 %v1344_v63, %s1215_s11  ;;  %1067 = vmatpush.xpose.msk.msra.mxu2 %vm137_vm8, %v136_v1 }
 0x20c   :  { %1068 = vmatmul.msk.f32.vlgmr.msra.gmra.mxu2 %vm137_vm8, %v1321_v55 }
 0x210   :  { %v163_v3 = vpop.permute.xlu0 %162 }
 0x211   :  { %318 = vrot.lane.b32.xlu0 %v1342_v61, %s1215_s11  ;;  %1069 = vmatpush.xpose.msk.msrb.mxu2 %vm137_vm8, %v163_v3 }
 0x214   :  { %1070 = vmatmul.msk.f32.vlgmr.msrb.gmra.mxu2 %vm137_vm8, %v1325_v57 }
 0x243   :  { %v189_v4 = vpop.permute.xlu2 %188 }
 0x244   :  { %1071 = vmatpush.xpose.msk.msra.mxu3 %vm137_vm8, %v189_v4 }
 0x247   :  { %1072 = vmatmul.msk.f32.vlgmr.msra.gmra.mxu3 %vm137_vm8, %v1333_v58 }
 0x25b   :  { %v241_v6 = vpop.permute.xlu2 %240 }
 0x263   :  { %v215_v5 = vpop.permute.xlu1 %214 }
 0x264   :  { %1073 = vmatpush.xpose.msk.msra.mxu2 %vm137_vm8, %v215_v5 }
 0x267   :  { %1074 = vmatmul.msk.f32.vlgmr.msra.gmra.mxu2 %vm137_vm8, %v1336_v59 }
 0x268   :  { %1075 = vmatpush.xpose.msk.msrb.mxu2 %vm137_vm8, %v241_v6 }
 0x26b   :  { %v293_v8 = vpop.permute.xlu1 %292 }
 0x26f   :  { %1076 = vmatmul.msk.f32.vlgmr.msrb.gmra.mxu2 %vm137_vm8, %v128_v62 }
 0x27b   :  { %v267_v7 = vpop.permute.xlu0 %266 }
 0x27c   :  { %1077 = vmatpush.xpose.msk.msrb.mxu3 %vm137_vm8, %v267_v7 }
 0x27f   :  { %1078 = vmatmul.msk.f32.vlgmr.msrb.gmra.mxu3 %vm137_vm8, %v1344_v63 }
 0x280   :  { %1079 = vmatpush.xpose.msk.msra.mxu3 %vm137_vm8, %v293_v8 }
 0x283   :  { %v319_v9 = vpop.permute.xlu0 %318 }
 0x284   :  { %1081 = vmatpush.xpose.msk.msra.mxu2 %vm137_vm8, %v319_v9 }
 0x287   :  { %1080 = vmatmul.msk.f32.vlgmr.msra.gmra.mxu3 %vm137_vm8, %v1339_v60  ;;  %1082 = vmatmul.msk.f32.vlgmr.msra.gmra.mxu2 %vm137_vm8, %v1342_v61 }
 0x28f   :  { %v159_v11 = vpop.f32.mrf.mxu2 }
 0x290   :  { %v344_v12 = vsel %vm137_vm8, %v159_v11, -inf }
 0x291   :  { %345 = vmax.xlane.f32.xlu2 %v344_v12 }
 0x297   :  { %v185_v15 = vpop.f32.mrf.mxu2 }
 0x298   :  { %v347_v16 = vsel %vm137_vm8, %v185_v15, -inf }
 0x2ca   :  { %v211_v13 = vpop.f32.mrf.mxu3 }
 0x2cb   :  { %v350_v14 = vsel %vm137_vm8, %v211_v13, -inf }
 0x2cc   :  { %351 = vmax.xlane.f32.xlu1 %v350_v14 }
 0x2d4   :  { %348 = vmax.xlane.f32.xlu1 %v347_v16  ;;  %v1119_v16 = vpack.i.bf16 %v1339_v60, %v1325_v57 }
 0x2ea   :  { %v237_v17 = vpop.f32.mrf.mxu2 }
 0x2eb   :  { %v353_v18 = vsel %vm137_vm8, %v237_v17, -inf }
 0x2ec   :  { %354 = vmax.xlane.f32.xlu2 %v353_v18 }
 0x2f2   :  { %v263_v30 = vpop.f32.mrf.mxu2 }
 0x2f3   :  { %v356_v31 = vsel %vm137_vm8, %v263_v30, -inf }
 0x302   :  { %v289_v19 = vpop.f32.mrf.mxu3 }
 0x303   :  { %v359_v20 = vsel %vm137_vm8, %v289_v19, -inf }
 0x304   :  { %360 = vmax.xlane.f32.xlu1 %v359_v20  ;;  %v346_v25 = vpop.xlane.xlu2 %345 }
 0x305   :  { %v368_v26 = vsub.f32 %v159_v11, %v346_v25 }
 0x307   :  { %v376_v27 = vmul.f32 1.442695, %v368_v26 }
 0x309   :  { %1146 = vpow2.f32 %v376_v27 }
 0x30a   :  { %v315_v32 = vpop.f32.mrf.mxu3  ;;  %v341_v42 = vpop.f32.mrf.mxu2 }
 0x30b   :  { %v362_v33 = vsel %vm137_vm8, %v315_v32, -inf  ;;  %v365_v44 = vsel %vm137_vm8, %v341_v42, -inf }
 0x30f   :  { %v1376_v28 = vpop.eup %1146 }
 0x310   :  { %v392_v29 = vsel %vm137_vm8, %v1376_v28, 0.0 }
 0x311   :  { %393 = vadd.xlane.f32.xlu0 %v392_v29 }
 0x319   :  { %357 = vmax.xlane.f32.xlu0 %v356_v31 }
 0x321   :  { %363 = vmax.xlane.f32.xlu0 %v362_v33 }
 0x335   :  { %1115 = vrot.lane.b32.xlu0 %v1114_v34, %s1217_s13 }
 0x33f   :  { %v352_v35 = vpop.xlane.xlu1 %351 }
 0x340   :  { %v370_v62 = vsub.f32 %v211_v13, %v352_v35 }
 0x342   :  { %v380_v4 = vmul.f32 1.442695, %v370_v62 }
 0x347   :  { %v349_v36 = vpop.xlane.xlu1 %348 }
 0x348   :  { %v369_v37 = vsub.f32 %v185_v15, %v349_v36 }
 0x34a   :  { %v378_v38 = vmul.f32 1.442695, %v369_v37 }
 0x34c   :  { %1148 = vpow2.f32 %v378_v38 }
 0x352   :  { %v1384_v40 = vpop.eup %1148 }
 0x353   :  { %v395_v41 = vsel %vm137_vm8, %v1384_v40, 0.0 }
 0x354   :  { %396 = vadd.xlane.f32.xlu2 %v395_v41 }
 0x35c   :  { %366 = vmax.xlane.f32.xlu2 %v365_v44 }
 0x35f   :  { %v355_v45 = vpop.xlane.xlu2 %354 }
 0x360   :  { %v371_v46 = vsub.f32 %v237_v17, %v355_v45 }
 0x362   :  { %v382_v47 = vmul.f32 1.442695, %v371_v46 }
 0x364   :  { %1150 = vpow2.f32 %v382_v47 }
 0x36a   :  { %v1389_v48 = vpop.eup %1150 }
 0x36b   :  { %v401_v49 = vsel %vm137_vm8, %v1389_v48, 0.0 }
 0x36c   :  { %402 = vadd.xlane.f32.xlu0 %v401_v49 }
 0x374   :  { %1110 = vrot.lane.b32.xlu2 %v1109_v50, %s1217_s13 }
 0x377   :  { %v361_v51 = vpop.xlane.xlu1 %360 }
 0x378   :  { %v373_v52 = vsub.f32 %v289_v19, %v361_v51 }
 0x37a   :  { %v386_v53 = vmul.f32 1.442695, %v373_v52 }
 0x37c   :  { %1152 = vpow2.f32 %v386_v53 }
 0x382   :  { %v1396_v54 = vpop.eup %1152 }
 0x383   :  { %v407_v56 = vsel %vm137_vm8, %v1396_v54, 0.0 }
 0x384   :  { %v394_v59 = vpop.xlane.xlu0 %393  ;;  %408 = vadd.xlane.f32.xlu1 %v407_v56 }
 0x385   :  { %v427_v29 = vand.u32 2147483648, %v394_v59  ;;  %vm421_vm10 = vweird.f32 %v394_v59  ;;  %v425_v31 = vand.u32 2147483647, %v394_v59 }
 0x387   :  { %v428_v57 = vor.u32 1.1754944e-38, %v427_v29  ;;  %vm426_vm12 = vcmp.eq.f32.partialorder %v425_v31, 8.507059e+37 }
 0x38c   :  { %v358_v1 = vpop.xlane.xlu0 %357 }
 0x38d   :  { %v372_v3 = vsub.f32 %v263_v30, %v358_v1 }
 0x38f   :  { %v384_v5 = vmul.f32 1.442695, %v372_v3 }
 0x391   :  { %1154 = vpow2.f32 %v384_v5 }
 0x392   :  { %1156 = vpow2.f32 %v380_v4 }
 0x394   :  { %v364_v55 = vpop.xlane.xlu0 %363 }
 0x395   :  { %v374_v58 = vsub.f32 %v315_v32, %v364_v55 }
 0x397   :  { %v1400_v6 = vpop.eup %1154  ;;  %v388_v7 = vmul.f32 1.442695, %v374_v58 }
 0x398   :  { %v404_v8 = vsel %vm137_vm8, %v1400_v6, 0.0  ;;  %v1404_v9 = vpop.eup %1156 }
 0x399   :  { %1158 = vpow2.f32 %v388_v7  ;;  %405 = vadd.xlane.f32.xlu1 %v404_v8  ;;  %v398_v11 = vsel %vm137_vm8, %v1404_v9, 0.0 }
 0x39a   :  { %1160 = vrcp.f32 %v394_v59 }
 0x39d   :  { %399 = vadd.xlane.f32.xlu2 %v398_v11 }
 0x39f   :  { %v1408_v12 = vpop.eup %1158 }
 0x3a0   :  { %v410_v13 = vsel %vm137_vm8, %v1408_v12, 0.0  ;;  %v1161_v17 = vpop.eup %1160 }
 0x3a1   :  { %411 = vadd.xlane.f32.xlu1 %v410_v13  ;;  %v417_v18 = vmul.f32 %v1161_v17, %v394_v59  ;;  %vm422_vm9 = vweird.f32 %v1161_v17 }
 0x3a2   :  { %vm423_vm11 = vmor %vm421_vm10, %vm422_vm9 }
 0x3a3   :  { %v418_v19 = vsub.f32 1.0, %v417_v18 }
 0x3a5   :  { %v419_v25 = vmul.f32 %v1161_v17, %v418_v19 }
 0x3a7   :  { %v1116_v14 = vpop.permute.xlu0 %1115  ;;  %v420_v26 = vadd.f32 %v1161_v17, %v419_v25 }
 0x3a8   :  { %v1118_v15 = vunpack.i.h.bf16 %v1116_v14  ;;  %v1117_v38 = vunpack.i.l.bf16 %v1116_v14 }
 0x3a9   :  { %v424_v32 = vsel %vm423_vm11, %v1161_v17, %v420_v26 }
 0x3aa   :  { %635 = vmatpush.msrb.mxu2 %v1118_v15  ;;  %v429_v60 = vsel %vm426_vm12, %v428_v57, %v424_v32 }
 0x3ab   :  { %v430_v36 = vmul.f32 %v1376_v28, %v429_v60 }
 0x3b5   :  { %718 = vrot.lane.b32.xlu2 %v1342_v61, %s1217_s13 }
 0x3ba   :  { %1120 = vrot.lane.b32.xlu1 %v1119_v16, %s1217_s13 }
 0x3c7   :  { %v1417_v20 = vpop.xlane.xlu2 %396 }
 0x3cf   :  { %v367_v27 = vpop.xlane.xlu2 %366 }
 0x3d0   :  { %v375_v30 = vsub.f32 %v341_v42, %v367_v27 }
 0x3d2   :  { %v390_v61 = vmul.f32 1.442695, %v375_v30 }
 0x3d4   :  { %1162 = vpow2.f32 %v390_v61 }
 0x3d7   :  { %v1111_v33 = vpop.permute.xlu2 %1110 }
 0x3d8   :  { %v1112_v34 = vunpack.i.l.bf16 %v1111_v33  ;;  %v1113_v35 = vunpack.i.h.bf16 %v1111_v33 }
 0x3da   :  { %v1420_v37 = vpop.eup %1162  ;;  %557 = vmatpush.msrb.mxu3 %v1112_v34  ;;  %609 = vmatpush.msra.mxu1 %v1113_v35 }
 0x3db   :  { %1083 = vmatmul.msk.f32.vlgmr.msrb.gmra.mxu3 %vm137_vm8, %v430_v36  ;;  %v413_v41 = vsel %vm137_vm8, %v1420_v37, 0.0 }
 0x3dc   :  { %661 = vmatpush.msra.mxu3 %v1117_v38  ;;  %414 = vadd.xlane.f32.xlu0 %v413_v41 }
 0x3df   :  { %v403_v42 = vpop.xlane.xlu0 %402 }
 0x3e0   :  { %1164 = vrcp.f32 %v403_v42  ;;  %v472_v47 = vand.u32 2147483648, %v403_v42  ;;  %v470_v28 = vand.u32 2147483647, %v403_v42  ;;  %vm466_vm14 = vweird.f32 %v403_v42 }
 0x3e1   :  { %1166 = vrcp.f32 %v1417_v20 }
 0x3e2   :  { %v473_v51 = vor.u32 1.1754944e-38, %v472_v47  ;;  %vm471_vm1 = vcmp.eq.f32.partialorder %v470_v28, 8.507059e+37 }
 0x3e6   :  { %v1165_v44 = vpop.eup %1164 }
 0x3e7   :  { %v462_v45 = vmul.f32 %v1165_v44, %v403_v42  ;;  %vm467_vm13 = vweird.f32 %v1165_v44  ;;  %v1432_v3 = vpop.eup %1166 }
 0x3e8   :  { %vm468_vm15 = vmor %vm466_vm14, %vm467_vm13  ;;  %vm437_vm11 = vweird.f32 %v1432_v3  ;;  %vm436_vm13 = vweird.f32 %v1417_v20 }
 0x3e9   :  { %v463_v46 = vsub.f32 1.0, %v462_v45  ;;  %vm438_vm14 = vmor %vm436_vm13, %vm437_vm11  ;;  %v440_v45 = vand.u32 2147483647, %v1417_v20  ;;  %vm754_vm13 = vcmask 130112  }
 0x3eb   :  { %v464_v49 = vmul.f32 %v1165_v44, %v463_v46 }
 0x3ed   :  { %v465_v50 = vadd.f32 %v1165_v44, %v464_v49 }
 0x3ef   :  { %v469_v52 = vsel %vm468_vm15, %v1165_v44, %v465_v50 }
 0x3f0   :  { %v474_v53 = vsel %vm471_vm1, %v473_v51, %v469_v52  ;;  %666 = vrot.lane.b32.xlu0 %v1344_v63, %s1217_s13  ;;  %v432_v63 = vmul.f32 %v1432_v3, %v1417_v20 }
 0x3f1   :  { %v475_v56 = vmul.f32 %v1389_v48, %v474_v53 }
 0x3f2   :  { %v433_v15 = vsub.f32 1.0, %v432_v63 }
 0x3f3   :  { %1086 = vmatmul.msk.f32.vlgmr.msrb.gmra.mxu2 %vm137_vm8, %v475_v56 }
 0x3f4   :  { %v434_v33 = vmul.f32 %v1432_v3, %v433_v15 }
 0x3f6   :  { %v435_v41 = vadd.f32 %v1432_v3, %v434_v33 }
 0x3f7   :  { %v1429_v59 = vpop.xlane.xlu1 %408 }
 0x40c   :  { %v406_v62 = vpop.xlane.xlu1 %405 }
 0x40d   :  { %1168 = vrcp.f32 %v406_v62  ;;  %v485_v7 = vand.u32 2147483647, %v406_v62  ;;  %v487_v8 = vand.u32 2147483648, %v406_v62  ;;  %vm481_vm3 = vweird.f32 %v406_v62 }
 0x40f   :  { %vm486_vm5 = vcmp.eq.f32.partialorder %v485_v7, 8.507059e+37  ;;  %v488_v19 = vor.u32 1.1754944e-38, %v487_v8  ;;  %v500_v7 = vand.u32 2147483647, %v1429_v59 }
 0x410   :  { %v400_v1 = vpop.xlane.xlu2 %399 }
 0x411   :  { %1170 = vrcp.f32 %v400_v1  ;;  %v457_v25 = vand.u32 2147483648, %v400_v1  ;;  %v455_v26 = vand.u32 2147483647, %v400_v1  ;;  %vm451_vm7 = vweird.f32 %v400_v1 }
 0x413   :  { %v1169_v4 = vpop.eup %1168  ;;  %v458_v60 = vor.u32 1.1754944e-38, %v457_v25  ;;  %vm456_vm10 = vcmp.eq.f32.partialorder %v455_v26, 8.507059e+37 }
 0x414   :  { %v477_v5 = vmul.f32 %v1169_v4, %v406_v62  ;;  %v412_v55 = vpop.xlane.xlu1 %411  ;;  %vm482_vm2 = vweird.f32 %v1169_v4 }
 0x415   :  { %1172 = vrcp.f32 %v412_v55  ;;  %vm483_vm4 = vmor %vm481_vm3, %vm482_vm2  ;;  %v517_v44 = vand.u32 2147483648, %v412_v55  ;;  %vm511_vm15 = vweird.f32 %v412_v55  ;;  %v515_v46 = vand.u32 2147483647, %v412_v55 }
 0x416   :  { %v478_v48 = vsub.f32 1.0, %v477_v5  ;;  %vm441_vm2 = vcmp.eq.f32.partialorder %v440_v45, 8.507059e+37  ;;  %1174 = vrcp.f32 %v1429_v59 }
 0x417   :  { %v1171_v58 = vpop.eup %1170  ;;  %v518_v28 = vor.u32 1.1754944e-38, %v517_v44  ;;  %vm516_vm3 = vcmp.eq.f32.partialorder %v515_v46, 8.507059e+37 }
 0x418   :  { %v479_v11 = vmul.f32 %v1169_v4, %v478_v48  ;;  %v447_v13 = vmul.f32 %v1171_v58, %v400_v1  ;;  %v719_v14 = vpop.permute.xlu2 %718  ;;  %vm452_vm6 = vweird.f32 %v1171_v58 }
 0x419   :  { %739 = vmatpush.msra.mxu2 %v719_v14  ;;  %vm453_vm9 = vmor %vm451_vm7, %vm452_vm6 }
 0x41a   :  { %v480_v16 = vadd.f32 %v1169_v4, %v479_v11  ;;  %v448_v17 = vsub.f32 1.0, %v447_v13 }
 0x41b   :  { %v1173_v18 = vpop.eup %1172 }
 0x41c   :  { %v484_v27 = vsel %vm483_vm4, %v1169_v4, %v480_v16  ;;  %v449_v29 = vmul.f32 %v1171_v58, %v448_v17  ;;  %v507_v30 = vmul.f32 %v1173_v18, %v412_v55  ;;  %vm512_vm12 = vweird.f32 %v1173_v18 }
 0x41d   :  { %v489_v31 = vsel %vm486_vm5, %v488_v19, %v484_v27  ;;  %vm513_vm1 = vmor %vm511_vm15, %vm512_vm12  ;;  %vm496_vm5 = vweird.f32 %v1429_v59 }
 0x41e   :  { %v508_v61 = vsub.f32 1.0, %v507_v30  ;;  %v490_v32 = vmul.f32 %v1400_v6, %v489_v31  ;;  %v450_v57 = vadd.f32 %v1171_v58, %v449_v29  ;;  %v442_v6 = vand.u32 2147483648, %v1417_v20  ;;  %v1175_v20 = vpop.eup %1174 }
 0x41f   :  { %vm497_vm4 = vweird.f32 %v1175_v20 }
 0x420   :  { %v509_v34 = vmul.f32 %v1173_v18, %v508_v61  ;;  %1087 = vmatmul.msk.f32.vlgmr.msra.gmra.mxu3 %vm137_vm8, %v490_v32  ;;  %v454_v35 = vsel %vm453_vm9, %v1171_v58, %v450_v57  ;;  %v443_v49 = vor.u32 1.1754944e-38, %v442_v6  ;;  %vm498_vm6 = vmor %vm496_vm5, %vm497_vm4  ;;  %v1124_v61 = vpack.i.bf16 %v1285_v22, %v1279_v21 }
 0x421   :  { %v459_v36 = vsel %vm456_vm10, %v458_v60, %v454_v35  ;;  %vm501_vm10 = vcmp.eq.f32.partialorder %v500_v7, 8.507059e+37 }
 0x422   :  { %v460_v38 = vmul.f32 %v1404_v9, %v459_v36  ;;  %v510_v42 = vadd.f32 %v1173_v18, %v509_v34  ;;  %v439_v9 = vsel %vm438_vm14, %v1432_v3, %v435_v41  ;;  %v492_v3 = vmul.f32 %v1175_v20, %v1429_v59 }
 0x423   :  { %v444_v50 = vsel %vm441_vm2, %v443_v49, %v439_v9  ;;  %vm765_vm14 = vcmask 195712   ;;  %v1137_v9 = vld [vmem:[%s1587_s4 + $0x3] ss:$0 sm:$0xff] }
 0x424   :  { %1085 = vmatmul.msk.f32.vlgmr.msra.gmra.mxu1 %vm137_vm8, %v460_v38  ;;  %v514_v47 = vsel %vm513_vm1, %v1173_v18, %v510_v42  ;;  %v445_v62 = vmul.f32 %v1384_v40, %v444_v50  ;;  %v493_v5 = vsub.f32 1.0, %v492_v3 }
 0x425   :  { %v519_v51 = vsel %vm516_vm3, %v518_v28, %v514_v47 }
 0x426   :  { %v520_v1 = vmul.f32 %v1408_v12, %v519_v51  ;;  %v494_v55 = vmul.f32 %v1175_v20, %v493_v5  ;;  %v502_v12 = vand.u32 2147483648, %v1429_v59 }
 0x428   :  { %v495_v40 = vadd.f32 %v1175_v20, %v494_v55  ;;  %v503_v15 = vor.u32 1.1754944e-38, %v502_v12  ;;  %v882_v12 = vld [vmem:[%s1585_s2 + $0x8] sm:$0xff] }
 0x42a   :  { %v499_v14 = vsel %vm498_vm6, %v1175_v20, %v495_v40  ;;  %v883_v40 = vld [vmem:[%s1585_s2 + $0x10] sm:$0xff] }
 0x42b   :  { %v504_v19 = vsel %vm501_vm10, %v503_v15, %v499_v14 }
 0x42c   :  { %v1121_v52 = vpop.permute.xlu1 %1120  ;;  %v505_v29 = vmul.f32 %v1396_v54, %v504_v19 }
 0x42d   :  { %v1122_v53 = vunpack.i.l.bf16 %v1121_v52  ;;  %v1123_v56 = vunpack.i.h.bf16 %v1121_v52 }
 0x42f   :  { %583 = vmatpush.msrb.mxu0 %v1122_v53  ;;  %713 = vmatpush.msrb.mxu1 %v1123_v56 }
 0x430   :  { %1084 = vmatmul.msk.f32.vlgmr.msrb.gmra.mxu0 %vm137_vm8, %v445_v62  ;;  %1089 = vmatmul.msk.f32.vlgmr.msrb.gmra.mxu1 %vm137_vm8, %v520_v1 }
 0x44f   :  { %v415_v4 = vpop.xlane.xlu0 %414 }
 0x450   :  { %1176 = vrcp.f32 %v415_v4  ;;  %v532_v8 = vand.u32 2147483648, %v415_v4  ;;  %v530_v13 = vand.u32 2147483647, %v415_v4  ;;  %vm526_vm9 = vweird.f32 %v415_v4 }
 0x452   :  { %v533_v17 = vor.u32 1.1754944e-38, %v532_v8  ;;  %vm531_vm12 = vcmp.eq.f32.partialorder %v530_v13, 8.507059e+37 }
 0x456   :  { %v1177_v63 = vpop.eup %1176 }
 0x457   :  { %v522_v48 = vmul.f32 %v1177_v63, %v415_v4  ;;  %vm527_vm7 = vweird.f32 %v1177_v63 }
 0x458   :  { %vm528_vm11 = vmor %vm526_vm9, %vm527_vm7 }
 0x459   :  { %v523_v58 = vsub.f32 1.0, %v522_v48  ;;  %v884_v48 = vld [vmem:[%s1585_s2 + $0x18] sm:$0xff] }
 0x45b   :  { %v524_v11 = vmul.f32 %v1177_v63, %v523_v58  ;;  %v881_v58 = vld [vmem:[%s1585_s2] sm:$0xff] }
 0x45d   :  { %v525_v16 = vadd.f32 %v1177_v63, %v524_v11 }
 0x45e   :  { %v559_v18 = vpop.f32.mrf.mxu3 }
 0x45f   :  { %v529_v25 = vsel %vm528_vm11, %v1177_v63, %v525_v16  ;;  %744 = vst.msk [vmem:[#allocation2] sm:$0xff] %vm137_vm8, %v559_v18 }
 0x460   :  { %v534_v26 = vsel %vm531_vm12, %v533_v17, %v529_v25 }
 0x461   :  { %v535_v59 = vmul.f32 %v1420_v37, %v534_v26  ;;  %v1129_v37 = vpack.i.bf16 %v1297_v24, %v1291_v23 }
 0x462   :  { %v667_v27 = vpop.permute.xlu0 %666 }
 0x463   :  { %687 = vmatpush.msra.mxu0 %v667_v27  ;;  %1090 = vmatmul.msk.f32.vlgmr.msra.gmra.mxu2 %vm137_vm8, %v535_v59 }
 0x464   :  { %1088 = vmatmul.msk.f32.vlgmr.msra.gmra.mxu0 %vm137_vm8, %v505_v29 }
 0x465   :  { %904 = vmatpush.msrb.mxu0 %v884_v48  ;;  %v1003_v48 = vld [vmem:[%s1586_s3] sm:$0xff] }
 0x467   :  { %905 = vmatpush.msrb.mxu0 %v883_v40 }
 0x469   :  { %906 = vmatpush.msrb.mxu0 %v882_v12 }
 0x46b   :  { %907 = vmatpush.msrb.mxu0 %v881_v58 }
 0x476   :  { %v637_v57 = vpop.f32.mrf.mxu2 }
 0x4a1   :  { %v611_v30 = vpop.f32.mrf.mxu1 }
 0x4a2   :  { %748 = vrot.lane.b32.xlu2 %v611_v30, %s1218_s14 }
 0x4a3   :  { %v663_v31 = vpop.f32.mrf.mxu3 }
 0x4a4   :  { %759 = vrot.lane.b32.xlu0 %v663_v31, %s1219_s15 }
 0x4aa   :  { %1125 = vrot.lane.b32.xlu2 %v1124_v61, %s1220_s16 }
 0x4ac   :  { %1130 = vrot.lane.b32.xlu0 %v1129_v37, %s1220_s16 }
 0x4ad   :  { %v585_v54 = vpop.f32.mrf.mxu0  ;;  %v715_v32 = vpop.f32.mrf.mxu1 }
 0x4ae   :  { %745 = vst.msk [vmem:[#allocation2 + $0x8] sm:$0xff] %vm137_vm8, %v585_v54  ;;  %770 = vrot.lane.b32.xlu1 %v715_v32, %s1221_s17  ;;  %vm776_vm8 = vcmask 261312  }
 0x4b6   :  { %750 = vrot.lane.b32.xlu1 %v637_v57, %s1218_s14 }
 0x4e1   :  { %v689_v60 = vpop.f32.mrf.mxu0 }
 0x4e2   :  { %761 = vrot.lane.b32.xlu2 %v689_v60, %s1219_s15 }
 0x4e6   :  { %v741_v33 = vpop.f32.mrf.mxu2 }
 0x4e7   :  { %772 = vrot.lane.b32.xlu0 %v741_v33, %s1221_s17 }
 0x4fc   :  { %v749_v21 = vpop.permute.xlu2 %748 }
 0x4fd   :  { %755 = vst.msk [vmem:[#allocation2] sm:$0xff] %vm754_vm13, %v749_v21 }
 0x504   :  { %v1126_v22 = vpop.permute.xlu2 %1125 }
 0x505   :  { %v1128_v23 = vunpack.i.h.bf16 %v1126_v22  ;;  %v1127_v24 = vunpack.i.l.bf16 %v1126_v22 }
 0x507   :  { %820 = vmatpush.msrb.mxu3 %v1127_v24  ;;  %v1016_v24 = vld [vmem:[%s1586_s3 + $0x68] sm:$0xff] }
 0x509   :  { %821 = vmatpush.msrb.mxu3 %v1128_v23  ;;  %v1017_v23 = vld [vmem:[%s1586_s3 + $0x70] sm:$0xff] }
 0x516   :  { %v760_v34 = vpop.permute.xlu0 %759 }
 0x517   :  { %766 = vst.msk [vmem:[#allocation2] sm:$0xff] %vm765_vm14, %v760_v34  ;;  %v1014_v34 = vld [vmem:[%s1586_s3 + $0x58] sm:$0xff] }
 0x51e   :  { %v1131_v35 = vpop.permute.xlu0 %1130 }
 0x51f   :  { %v1133_v36 = vunpack.i.h.bf16 %v1131_v35  ;;  %v1132_v38 = vunpack.i.l.bf16 %v1131_v35 }
 0x520   :  { %v771_v41 = vpop.permute.xlu1 %770 }
 0x521   :  { %777 = vst.msk [vmem:[#allocation2] sm:$0xff] %vm776_vm8, %v771_v41  ;;  %822 = vmatpush.msrb.mxu3 %v1132_v38  ;;  %v1013_v38 = vld [vmem:[%s1586_s3 + $0x50] sm:$0xff] }
 0x523   :  { %823 = vmatpush.msrb.mxu3 %v1133_v36 }
 0x528   :  { %v751_v42 = vpop.permute.xlu1 %750  ;;  %v779_v6 = vld [vmem:[#allocation2] sm:$0xff] }
 0x529   :  { %756 = vst.msk [vmem:[#allocation2 + $0x8] sm:$0xff] %vm754_vm13, %v751_v42  ;;  %1091 = vmatmul.msk.f32.vlgmr.msrb.gmra.mxu3 %vm29_vm0, %v779_v6  ;;  %v1012_v42 = vld [vmem:[%s1586_s3 + $0x48] sm:$0xff] }
 0x53c   :  { %v762_v44 = vpop.permute.xlu2 %761 }
 0x53d   :  { %767 = vst.msk [vmem:[#allocation2 + $0x8] sm:$0xff] %vm765_vm14, %v762_v44  ;;  %v1011_v44 = vld [vmem:[%s1586_s3 + $0x40] sm:$0xff] }
 0x559   :  { %v773_v45 = vpop.permute.xlu0 %772 }
 0x55a   :  { %778 = vst.msk [vmem:[#allocation2 + $0x8] sm:$0xff] %vm776_vm8, %v773_v45 }
 0x561   :  { %v780_v46 = vld [vmem:[#allocation2 + $0x8] sm:$0xff] }
 0x562   :  { %1092 = vmatmul.msk.f32.gmra.mxu3 %vm29_vm0, %v780_v46  ;;  %v1010_v46 = vld [vmem:[%s1586_s3 + $0x38] sm:$0xff] }
 0x5ac   :  { %v825_v47 = vpop.f32.mrf.mxu3 }
 0x5ad   :  { %v826_v49 = vadd.f32 %v1137_v9, %v825_v47 }
 0x5af   :  { %v1478_v28 = vadd.f32 %v826_v49, %v1257_v0  ;;  %v1009_v49 = vld [vmem:[%s1586_s3 + $0x30] sm:$0xff] }
 0x5b1   :  { %v833_v50 = vsel %vm29_vm0, %v1478_v28, 0.0 }
 0x5b2   :  { %834 = vadd.xlane.f32.xlu1 %v833_v50 }
 0x5e5   :  { %v828_v51 = vpop.f32.mrf.mxu3 }
 0x5e6   :  { %v829_v52 = vadd.f32 %v1137_v9, %v828_v51 }
 0x5e8   :  { %v1483_v53 = vadd.f32 %v829_v52, %v1264_v2  ;;  %v1008_v52 = vld [vmem:[%s1586_s3 + $0x28] sm:$0xff] }
 0x5ea   :  { %v836_v56 = vsel %vm29_vm0, %v1483_v53, 0.0 }
 0x5eb   :  { %837 = vadd.xlane.f32.xlu2 %v836_v56 }
 0x625   :  { %v835_v62 = vpop.xlane.xlu1 %834 }
 0x626   :  { %v839_v1 = vmul.f32 %v835_v62, %v1268_v10 }
 0x628   :  { %v841_v20 = vsub.f32 %v1478_v28, %v839_v1  ;;  %v1007_v1 = vld [vmem:[%s1586_s3 + $0x20] sm:$0xff] }
 0x62a   :  { %v843_v0 = vmul.f32 %v841_v20, %v841_v20 }
 0x62c   :  { %v845_v3 = vsel %vm29_vm0, %v843_v0, 0.0  ;;  %v1006_v0 = vld [vmem:[%s1586_s3 + $0x18] sm:$0xff] }
 0x62d   :  { %846 = vadd.xlane.f32.xlu0 %v845_v3 }
 0x65e   :  { %v838_v4 = vpop.xlane.xlu2 %837 }
 0x65f   :  { %v840_v5 = vmul.f32 %v838_v4, %v1268_v10 }
 0x661   :  { %v842_v55 = vsub.f32 %v1483_v53, %v840_v5  ;;  %v1005_v5 = vld [vmem:[%s1586_s3 + $0x10] sm:$0xff] }
 0x663   :  { %v844_v2 = vmul.f32 %v842_v55, %v842_v55 }
 0x665   :  { %v848_v63 = vsel %vm29_vm0, %v844_v2, 0.0  ;;  %v1004_v2 = vld [vmem:[%s1586_s3 + $0x8] sm:$0xff] }
 0x666   :  { %849 = vadd.xlane.f32.xlu1 %v848_v63 }
 0x6a0   :  { %v847_v7 = vpop.xlane.xlu0 %846 }
 0x6a1   :  { %v851_v8 = vmul.f32 %v847_v7, %v1268_v10 }
 0x6a3   :  { %v853_v11 = vadd.f32 1e-05, %v851_v8 }
 0x6a5   :  { %1178 = vrsqrt.f32 %v853_v11  ;;  %vm861_vm1 = vweird.f32 %v853_v11 }
 0x6ab   :  { %v1179_v13 = vpop.eup %1178 }
 0x6ac   :  { %v856_v14 = vmul.f32 %v1179_v13, %v853_v11  ;;  %vm862_vm15 = vweird.f32 %v1179_v13 }
 0x6ad   :  { %vm863_vm2 = vmor %vm861_vm1, %vm862_vm15 }
 0x6ae   :  { %v857_v15 = vmul.f32 %v1179_v13, %v856_v14 }
 0x6b0   :  { %v858_v16 = vmul.f32 0.5, %v857_v15 }
 0x6b2   :  { %v859_v17 = vsub.f32 1.5, %v858_v16 }
 0x6b4   :  { %v860_v18 = vmul.f32 %v1179_v13, %v859_v17 }
 0x6b6   :  { %v864_v19 = vsel %vm863_vm2, %v1179_v13, %v860_v18 }
 0x6b7   :  { %v875_v25 = vmul.f32 %v864_v19, %v841_v20 }
 0x6b9   :  { %v877_v26 = vmul.f32 %v1305_v39, %v875_v25 }
 0x6bb   :  { %v879_v59 = vadd.f32 %v1310_v43, %v877_v26 }
 0x6bd   :  { %1093 = vmatmul.msk.f32.vlgmr.msrb.gmra.mxu0 %vm29_vm0, %v879_v59 }
 0x6d9   :  { %v850_v27 = vpop.xlane.xlu1 %849 }
 0x6da   :  { %v852_v29 = vmul.f32 %v850_v27, %v1268_v10  ;;  %v1018_v10 = vld [vmem:[%s1586_s3 + $0x78] sm:$0xff] }
 0x6db   :  { %1020 = vmatpush.msra.mxu1 %v1018_v10 }
 0x6dc   :  { %v854_v30 = vadd.f32 1e-05, %v852_v29 }
 0x6dd   :  { %1021 = vmatpush.msra.mxu1 %v1017_v23 }
 0x6de   :  { %1180 = vrsqrt.f32 %v854_v30  ;;  %vm871_vm4 = vweird.f32 %v854_v30 }
 0x6df   :  { %1022 = vmatpush.msra.mxu1 %v1016_v24 }
 0x6e4   :  { %v1181_v31 = vpop.eup %1180 }
 0x6e5   :  { %v866_v61 = vmul.f32 %v1181_v31, %v854_v30  ;;  %vm872_vm3 = vweird.f32 %v1181_v31 }
 0x6e6   :  { %vm873_vm5 = vmor %vm871_vm4, %vm872_vm3 }
 0x6e7   :  { %v867_v37 = vmul.f32 %v1181_v31, %v866_v61 }
 0x6e9   :  { %v868_v54 = vmul.f32 0.5, %v867_v37 }
 0x6eb   :  { %v869_v32 = vsub.f32 1.5, %v868_v54 }
 0x6ed   :  { %v870_v57 = vmul.f32 %v1181_v31, %v869_v32 }
 0x6ef   :  { %v874_v60 = vsel %vm873_vm5, %v1181_v31, %v870_v57 }
 0x6f0   :  { %v876_v33 = vmul.f32 %v874_v60, %v842_v55 }
 0x6f2   :  { %v878_v21 = vmul.f32 %v1305_v39, %v876_v33  ;;  %v1525_v39 = vld [vmem:[%s1587_s4 + $0x4] ss:$0 sm:$0xff] }
 0x6f4   :  { %v880_v22 = vadd.f32 %v1310_v43, %v878_v21  ;;  %v1015_v43 = vld [vmem:[%s1586_s3 + $0x60] sm:$0xff] }
 0x6f5   :  { %1023 = vmatpush.msra.mxu1 %v1015_v43 }
 0x6f6   :  { %1094 = vmatmul.msk.f32.gmra.mxu0 %vm29_vm0, %v880_v22 }
 0x6f7   :  { %1024 = vmatpush.msra.mxu1 %v1014_v34 }
 0x6f9   :  { %1025 = vmatpush.msra.mxu1 %v1013_v38 }
 0x6fb   :  { %1026 = vmatpush.msra.mxu1 %v1012_v42 }
 0x6fd   :  { %1027 = vmatpush.msra.mxu1 %v1011_v44 }
 0x6ff   :  { %1028 = vmatpush.msra.mxu1 %v1010_v46 }
 0x701   :  { %1029 = vmatpush.msra.mxu1 %v1009_v49 }
 0x703   :  { %1030 = vmatpush.msra.mxu1 %v1008_v52 }
 0x705   :  { %1031 = vmatpush.msra.mxu1 %v1007_v1 }
 0x707   :  { %1032 = vmatpush.msra.mxu1 %v1006_v0 }
 0x709   :  { %1033 = vmatpush.msra.mxu1 %v1005_v5 }
 0x70b   :  { %1034 = vmatpush.msra.mxu1 %v1004_v2 }
 0x70d   :  { %1035 = vmatpush.msra.mxu1 %v1003_v48 }
 0x73a   :  { %v909_v35 = vpop.f32.mrf.mxu0 }
 0x73b   :  { %v1534_v36 = vadd.f32 %v1525_v39, %v909_v35 }
 0x73d   :  { %v917_v41 = vmul.f32 0.70710677, %v1534_v36  ;;  %v915_v54 = vmul.f32 0.5, %v1534_v36 }
 0x73f   :  { %v919_v6 = vmul.f32 %v917_v41, %v917_v41 }
 0x741   :  { %v920_v45 = vmin.f32 %v919_v6, 16.0 }
 0x743   :  { %v921_v9 = vmul.f32 2.1237322e-06, %v920_v45  ;;  %v932_v47 = vmul.f32 3.8918573e-05, %v920_v45 }
 0x745   :  { %v922_v50 = vadd.f32 0.00028619796, %v921_v9  ;;  %v933_v51 = vadd.f32 0.001143296, %v932_v47 }
 0x747   :  { %v923_v56 = vmul.f32 %v922_v50, %v920_v45  ;;  %v934_v62 = vmul.f32 %v933_v51, %v920_v45 }
 0x749   :  { %v935_v20 = vadd.f32 0.014752088, %v934_v62  ;;  %v924_v3 = vadd.f32 0.0036580483, %v923_v56 }
 0x74b   :  { %v936_v4 = vmul.f32 %v935_v20, %v920_v45  ;;  %v925_v63 = vmul.f32 %v924_v3, %v920_v45 }
 0x74d   :  { %v937_v55 = vadd.f32 0.112945676, %v936_v4  ;;  %v926_v58 = vadd.f32 0.05243302, %v925_v63 }
 0x74f   :  { %v938_v40 = vmul.f32 %v937_v55, %v920_v45  ;;  %v927_v11 = vmul.f32 %v926_v58, %v920_v45 }
 0x751   :  { %v939_v12 = vadd.f32 0.4994258, %v938_v40  ;;  %v928_v13 = vadd.f32 0.18741608, %v927_v11 }
 0x753   :  { %v940_v7 = vmul.f32 %v939_v12, %v920_v45  ;;  %v929_v15 = vmul.f32 %v928_v13, %v920_v45 }
 0x755   :  { %v941_v8 = vadd.f32 1.0, %v940_v7  ;;  %v930_v19 = vadd.f32 1.1283791, %v929_v15 }
 0x757   :  { %1182 = vrcp.f32 %v941_v8  ;;  %v953_v18 = vand.u32 2147483648, %v941_v8  ;;  %v951_v26 = vand.u32 2147483647, %v941_v8  ;;  %vm947_vm7 = vweird.f32 %v941_v8 }
 0x758   :  { %v931_v29 = vmul.f32 %v930_v19, %v917_v41 }
 0x759   :  { %v954_v27 = vor.u32 1.1754944e-38, %v953_v18  ;;  %vm952_vm10 = vcmp.eq.f32.partialorder %v951_v26, 8.507059e+37 }
 0x75d   :  { %v1183_v14 = vpop.eup %1182 }
 0x75e   :  { %v943_v16 = vmul.f32 %v1183_v14, %v941_v8  ;;  %vm948_vm6 = vweird.f32 %v1183_v14  ;;  %v1139_v8 = vld [vmem:[%s1587_s4 + $0x5] ss:$0 sm:$0xff]  ;;  %s1223_s4 = smov 128  }
 0x75f   :  { %vm949_vm9 = vmor %vm947_vm7, %vm948_vm6 }
 0x760   :  { %v944_v17 = vsub.f32 1.0, %v943_v16 }
 0x762   :  { %v945_v25 = vmul.f32 %v1183_v14, %v944_v17 }
 0x764   :  { %v946_v59 = vadd.f32 %v1183_v14, %v945_v25 }
 0x766   :  { %v950_v30 = vsel %vm949_vm9, %v1183_v14, %v946_v59 }
 0x767   :  { %v955_v31 = vsel %vm952_vm10, %v954_v27, %v950_v30 }
 0x768   :  { %v956_v61 = vmul.f32 %v955_v31, %v931_v29 }
 0x76a   :  { %v1095_v37 = vclamps-f32 %v956_v61, 1.0 }
 0x76c   :  { %v999_v32 = vadd.f32 1.0, %v1095_v37 }
 0x76e   :  { %v1001_v57 = vmul.f32 %v999_v32, %v915_v54 }
 0x770   :  { %1036 = vmatmul.f32.vlgmr.msra.gmra.mxu1 %v1001_v57 }
 0x773   :  { %v912_v60 = vpop.f32.mrf.mxu0 }
 0x774   :  { %v913_v33 = vadd.f32 %v1525_v39, %v912_v60 }
 0x776   :  { %v918_v21 = vmul.f32 0.70710677, %v913_v33  ;;  %v916_v12 = vmul.f32 0.5, %v913_v33 }
 0x778   :  { %v959_v22 = vmul.f32 %v918_v21, %v918_v21 }
 0x77a   :  { %v960_v10 = vmin.f32 %v959_v22, 16.0 }
 0x77c   :  { %v961_v23 = vmul.f32 2.1237322e-06, %v960_v10  ;;  %v972_v24 = vmul.f32 3.8918573e-05, %v960_v10 }
 0x77e   :  { %v962_v43 = vadd.f32 0.00028619796, %v961_v23  ;;  %v973_v34 = vadd.f32 0.001143296, %v972_v24 }
 0x780   :  { %v963_v35 = vmul.f32 %v962_v43, %v960_v10  ;;  %v974_v38 = vmul.f32 %v973_v34, %v960_v10 }
 0x782   :  { %v975_v41 = vadd.f32 0.014752088, %v974_v38  ;;  %v964_v42 = vadd.f32 0.0036580483, %v963_v35 }
 0x784   :  { %v976_v6 = vmul.f32 %v975_v41, %v960_v10  ;;  %v965_v36 = vmul.f32 %v964_v42, %v960_v10 }
 0x786   :  { %v977_v44 = vadd.f32 0.112945676, %v976_v6  ;;  %v966_v9 = vadd.f32 0.05243302, %v965_v36 }
 0x788   :  { %v978_v45 = vmul.f32 %v977_v44, %v960_v10  ;;  %v967_v39 = vmul.f32 %v966_v9, %v960_v10 }
 0x78a   :  { %v979_v46 = vadd.f32 0.4994258, %v978_v45  ;;  %v968_v50 = vadd.f32 0.18741608, %v967_v39 }
 0x78c   :  { %v980_v47 = vmul.f32 %v979_v46, %v960_v10  ;;  %v969_v52 = vmul.f32 %v968_v50, %v960_v10 }
 0x78e   :  { %v981_v49 = vadd.f32 1.0, %v980_v47  ;;  %v970_v20 = vadd.f32 1.1283791, %v969_v52 }
 0x790   :  { %1184 = vrcp.f32 %v981_v49  ;;  %v993_v1 = vand.u32 2147483648, %v981_v49  ;;  %v991_v3 = vand.u32 2147483647, %v981_v49  ;;  %vm987_vm12 = vweird.f32 %v981_v49 }
 0x791   :  { %v971_v55 = vmul.f32 %v970_v20, %v918_v21 }
 0x792   :  { %v994_v5 = vor.u32 1.1754944e-38, %v993_v1  ;;  %vm992_vm14 = vcmp.eq.f32.partialorder %v991_v3, 8.507059e+37 }
 0x796   :  { %v1185_v51 = vpop.eup %1184 }
 0x797   :  { %v983_v56 = vmul.f32 %v1185_v51, %v981_v49  ;;  %vm988_vm11 = vweird.f32 %v1185_v51 }
 0x798   :  { %vm989_vm13 = vmor %vm987_vm12, %vm988_vm11 }
 0x799   :  { %v984_v62 = vsub.f32 1.0, %v983_v56 }
 0x79b   :  { %v985_v0 = vmul.f32 %v1185_v51, %v984_v62 }
 0x79d   :  { %v986_v4 = vadd.f32 %v1185_v51, %v985_v0 }
 0x79f   :  { %v990_v2 = vsel %vm989_vm13, %v1185_v51, %v986_v4 }
 0x7a0   :  { %v995_v63 = vsel %vm992_vm14, %v994_v5, %v990_v2 }
 0x7a1   :  { %v996_v48 = vmul.f32 %v995_v63, %v971_v55 }
 0x7a3   :  { %v1096_v40 = vclamps-f32 %v996_v48, 1.0 }
 0x7a5   :  { %v1000_v58 = vadd.f32 1.0, %v1096_v40 }
 0x7a7   :  { %v1002_v7 = vmul.f32 %v1000_v58, %v916_v12 }
 0x7a9   :  { %1039 = vmatmul.f32.gmra.mxu1 %v1002_v7 }
 0x7ed   :  { %v1037_v11 = vpop.f32.mrf.mxu1 }
 0x7ee   :  { %v1038_v13 = vadd.f32 %v1139_v8, %v1037_v11 }
 0x7f0   :  { %v1043_v14 = vadd.f32 %v1038_v13, %v1478_v28 }
 0x7f2   :  { %1045 = vst.msk [vmem:[#allocation3] sm:$0xff] %vm29_vm0, %v1043_v14 }
 0x826   :  { %v1040_v15 = vpop.f32.mrf.mxu1 }
 0x827   :  { %v1041_v16 = vadd.f32 %v1139_v8, %v1040_v15 }
 0x829   :  { %v1044_v17 = vadd.f32 %v1041_v16, %v1483_v53 }
 0x82b   :  { %1046 = vst.msk [vmem:[#allocation3 + $0x8] sm:$0xff] %vm29_vm0, %v1044_v17 }
 0x82c   :  { %1059 = dma.vmem_to_hbm [thread:$0]  %s1052_s9, 256, %s1054_s12, [#allocation4], %s1223_s4, %s1223_s4, %s1218_s14  }
 0x82d   :  { %1210 = dma.done.wait [#allocation4], 256  }
 0x82e   :  { %1211 = vsyncadd [#allocation4], 4294967040 }
 0x82f   :  { %1064 = vsyncpa [#allocation4], 1 }

</bundles_post_ra>
